<compile_context>
chip_gen: v6e
topology: v6e:2x2x1
jax: 0.10.0
libtpu: 0.0.40
codegen_flags: <defaults>
</compile_context>

<pallas_src>
import jax
import jax.numpy as jnp
from jax.experimental import pallas as pl
from jax.experimental.pallas import tpu as pltpu


def _round_up(x, m):
    return ((x + m - 1) // m) * m


def _choose_row_tile(m_rows, target_rows=2048, min_rows=16):
    """Row tile: multiple of 16 (bf16 sublane pack), capped at target_rows,
    and >= 2 grid steps once there is enough work (v7x megacore)."""
    if m_rows <= min_rows:
        return min_rows
    half = _round_up(pl.cdiv(m_rows, 2), min_rows)
    return max(min_rows, min(target_rows, half))


def _entity_mapping_kernel(x_ref, w1_ref, w2_ref, o_ref):
    # x_ref : (Mt, K)       bf16, K = P*E (P tokens packed per 128-lane row)
    # w1_ref: (K, P*D*H)    bf16, block-diagonal over packed tokens
    # w2_ref: (P*D*H, P*D)  bf16, block-diagonal over tokens AND partitions
    # o_ref : (Mt, P*D)     f32
    inter = jnp.maximum(                                    # relu in f32
        jnp.dot(x_ref[...], w1_ref[...], preferred_element_type=jnp.float32),
        0.0,
    )                                                       # (Mt, P*D*H) f32
    logits = jnp.dot(inter.astype(jnp.bfloat16), w2_ref[...],
                     preferred_element_type=jnp.float32)    # (Mt, P*D) f32
    o_ref[...] = jax.nn.sigmoid(logits).astype(o_ref.dtype)


def _pack_weights(w1, w2, pack):
    """Trace-time weight re-layout (all plumbing stays out of the kernel).

    w1:(D,E,H), w2:(D,H,L) -> bf16 W1_pack:(P*E, P*D*H), W2_pack:(P*D*H, P*D).
    """
    D, E, H = w1.shape
    DH = D * H
    # W1_cat[e, d*H+h] = w1[d, e, h]
    w1_cat = jnp.transpose(w1.astype(jnp.float32), (1, 0, 2)).reshape(E, DH)
    # einsum 'bdh,dhl->bd' contracts h AND l, so fold l into the weight.
    w2_eff = w2.astype(jnp.float32).sum(axis=-1)                     # (D, H)
    # Block-diagonal over partitions: W2_blk[d*H+h, k] = w2_eff[d,h]*(k==d)
    eye_d = jnp.eye(D, dtype=jnp.float32)
    w2_blk = (w2_eff[:, :, None] * eye_d[:, None, :]).reshape(DH, D)
    # Replicate both on a P-block diagonal (token packing).
    eye_p = jnp.eye(pack, dtype=jnp.float32)
    w1_pack = (eye_p[:, None, :, None] * w1_cat[None, :, None, :]
               ).reshape(pack * E, pack * DH)
    w2_pack = (eye_p[:, None, :, None] * w2_blk[None, :, None, :]
               ).reshape(pack * DH, pack * D)
    return w1_pack.astype(jnp.bfloat16), w2_pack.astype(jnp.bfloat16)


def _entity_mapping_flat(x_flat, w1, w2, *, target_rows=2048):
    """x_flat:(M,E) -> (M,D) f32 via one fused Pallas kernel."""
    M, E = x_flat.shape
    D, _, H = w1.shape
    DH = D * H

    # Pack P tokens per 128-lane row when E divides 128; otherwise fall back
    # to one token per row (block widths then equal the full array dims).
    P = 128 // E if (E < 128 and 128 % E == 0) else 1
    K = P * E

    w1_pack, w2_pack = _pack_weights(w1, w2, P)

    m_rows = pl.cdiv(M, P)
    mt_rows = _choose_row_tile(m_rows, target_rows=target_rows)
    m_rows_pad = _round_up(m_rows, mt_rows)
    m_tok_pad = m_rows_pad * P

    x = x_flat
    if m_tok_pad != M:  # zero rows only touch their own (sliced-off) outputs
        x = jnp.pad(x, ((0, m_tok_pad - M), (0, 0)))
    # pad + packing reshape + bf16 cast fuse into a single pass over X.
    x = x.reshape(m_rows_pad, K).astype(jnp.bfloat16)

    out = pl.pallas_call(
        _entity_mapping_kernel,
        out_shape=jax.ShapeDtypeStruct((m_rows_pad, P * D), jnp.float32),
        grid_spec=pltpu.PrefetchScalarGridSpec(
            num_scalar_prefetch=0,
            grid=(m_rows_pad // mt_rows,),
            in_specs=[
                pl.BlockSpec((mt_rows, K), lambda i: (i, 0)),      # X tile
                pl.BlockSpec((K, P * DH), lambda i: (0, 0)),       # W1 (resident)
                pl.BlockSpec((P * DH, P * D), lambda i: (0, 0)),   # W2 (resident)
            ],
            out_specs=pl.BlockSpec((mt_rows, P * D), lambda i: (i, 0)),
        ),
        compiler_params=pltpu.CompilerParams(
            dimension_semantics=("parallel",),
        ),
    )(x, w1_pack, w2_pack)

    # Un-pack: packed row r, lanes [q*D:(q+1)*D] = outputs of token r*P+q.
    return out.reshape(m_rows_pad * P, D)[:M]


def entity_mapping_forward(e_embedding, w1, w2):
    """Reproduces EntityMapping.forward (modulelist=True).

    e_embedding: (B, E) -> (B, D);   (B, N, E) -> (N, B, D)
    """
    if e_embedding.ndim == 2:
        return _entity_mapping_flat(e_embedding, w1, w2)
    elif e_embedding.ndim == 3:
        B, N, E = e_embedding.shape
        out = _entity_mapping_flat(e_embedding.reshape(B * N, E), w1, w2)
        return out.reshape(B, N, -1).transpose(1, 0, 2)
    else:
        raise ValueError("e_embedding must be rank 2 or 3")


def _reference(e_embedding, w1, w2):
    """Pure-JAX (f32) mirror of the PyTorch forward, for validation."""
    if e_embedding.ndim == 2:
        rep = jnp.repeat(e_embedding[:, None, :], w1.shape[0], axis=1)      # (B,D,E)
        inter = jax.nn.relu(jnp.einsum('bde,deh->bdh', rep, w1))
        return jax.nn.sigmoid(jnp.einsum('bdh,dhl->bd', inter, w2))
    else:
        rep = jnp.repeat(e_embedding[:, None, :, :], w1.shape[0], axis=1)   # (B,D,N,E)
        inter = jax.nn.relu(jnp.einsum('bdne,deh->bdnh', rep, w1))
        out = jax.nn.sigmoid(jnp.einsum('bdnh,dhl->bnd', inter, w2))
        return jnp.transpose(out, (1, 0, 2))


if __name__ == "__main__":
    # Module hyper-params (small, consistent with __init__):
    entity_dim = 32       # E
    hidden_dim = 16       # H
    n_partitions = 4      # D
    B, N = 2, 3

    key = jax.random.PRNGKey(0)
    k_w1, k_w2, k_x2, k_x3 = jax.random.split(key, 4)

    # nn.init.uniform_(a=0, b=1) -> U(0,1) weights.
    w1 = jax.random.uniform(k_w1, (n_partitions, entity_dim, hidden_dim),
                            dtype=jnp.float32)
    w2 = jax.random.uniform(k_w2, (n_partitions, hidden_dim, 1),
                            dtype=jnp.float32)

    # 2D input case: (B, E) -> (B, D)
    x2 = jax.random.normal(k_x2, (B, entity_dim), dtype=jnp.float32)
    out2 = jax.block_until_ready(entity_mapping_forward(x2, w1, w2))
    ref2 = _reference(x2, w1, w2)
    assert out2.shape == (B, n_partitions)
    # bf16 MXU operands with f32 accumulation -> loosened tolerance vs f32 ref.
    assert jnp.allclose(out2, ref2, atol=5e-2), float(jnp.max(jnp.abs(out2 - ref2)))

    # 3D (negative-samples) case: (B, N, E) -> (N, B, D)
    x3 = jax.random.normal(k_x3, (B, N, entity_dim), dtype=jnp.float32)
    out3 = jax.block_until_ready(entity_mapping_forward(x3, w1, w2))
    ref3 = _reference(x3, w1, w2)
    assert out3.shape == (N, B, n_partitions)
    assert jnp.allclose(out3, ref3, atol=5e-2), float(jnp.max(jnp.abs(out3 - ref3)))

    print("KERNEL_OK")
</pallas_src>

<mosaic_0001>
module attributes {stable_mosaic.version = 11 : i64} {
  func.func @_entity_mapping_kernel(%arg0: i32, %arg1: memref<16x128xbf16, #tpu.memory_space<vmem>>, %arg2: memref<128x256xbf16, #tpu.memory_space<vmem>>, %arg3: memref<256x16xbf16, #tpu.memory_space<vmem>>, %arg4: memref<16x16xf32, #tpu.memory_space<vmem>>) attributes {dimension_semantics = [#tpu.dimension_semantics<parallel>], iteration_bounds = array<i64: 1>, scalar_prefetch = 0 : i64, scratch_operands = 0 : i64, tpu.core_type = #tpu.core_type<tc>, window_params = [{transform_indices = @transform_0, window_bounds = array<i64: 16, 128>}, {pipeline_mode = #tpu.pipeline_mode<synchronous>, transform_indices = @transform_1, window_bounds = array<i64: 128, 256>}, {pipeline_mode = #tpu.pipeline_mode<synchronous>, transform_indices = @transform_2, window_bounds = array<i64: 256, 16>}, {transform_indices = @transform_3, window_bounds = array<i64: 16, 16>}]} {
    %c0 = arith.constant 0 : index
    %c0_0 = arith.constant 0 : index
    %0 = vector.load %arg1[%c0, %c0_0] : memref<16x128xbf16, #tpu.memory_space<vmem>>, vector<16x128xbf16>
    %c0_1 = arith.constant 0 : index
    %c0_2 = arith.constant 0 : index
    %1 = vector.load %arg2[%c0_1, %c0_2] : memref<128x256xbf16, #tpu.memory_space<vmem>>, vector<128x256xbf16>
    %cst = arith.constant dense<0.000000e+00> : vector<16x256xf32>
    %2 = tpu.matmul %0, %1, %cst {dimension_numbers = #tpu.dot_dimension_numbers<[1], [0], [0], [1], [0, 0, 1, 1], [], []>} : vector<16x128xbf16>, vector<128x256xbf16>, vector<16x256xf32> -> vector<16x256xf32>
    %cst_3 = arith.constant 0.000000e+00 : f32
    %3 = vector.broadcast %cst_3 : f32 to vector<16x256xf32>
    %4 = arith.maximumf %2, %3 : vector<16x256xf32>
    %5 = arith.truncf %4 : vector<16x256xf32> to vector<16x256xbf16>
    %c0_4 = arith.constant 0 : index
    %c0_5 = arith.constant 0 : index
    %6 = vector.load %arg3[%c0_4, %c0_5] : memref<256x16xbf16, #tpu.memory_space<vmem>>, vector<256x16xbf16>
    %cst_6 = arith.constant dense<0.000000e+00> : vector<16x16xf32>
    %7 = tpu.matmul %5, %6, %cst_6 {dimension_numbers = #tpu.dot_dimension_numbers<[1], [0], [0], [1], [0, 0, 1, 1], [], []>} : vector<16x256xbf16>, vector<256x16xbf16>, vector<16x16xf32> -> vector<16x16xf32>
    %8 = arith.negf %7 : vector<16x16xf32>
    %9 = math.exp %8 : vector<16x16xf32>
    %cst_7 = arith.constant 1.000000e+00 : f32
    %10 = vector.broadcast %cst_7 : f32 to vector<16x16xf32>
    %11 = arith.addf %10, %9 : vector<16x16xf32>
    %12 = arith.divf %10, %11 : vector<16x16xf32>
    %c0_8 = arith.constant 0 : index
    %c0_9 = arith.constant 0 : index
    %13 = vector.load %arg4[%c0_8, %c0_9] : memref<16x16xf32, #tpu.memory_space<vmem>>, vector<16x16xf32>
    tpu.vector_store %arg4[%c0_8, %c0_9], %12 {strides = array<i32>} : memref<16x16xf32, #tpu.memory_space<vmem>>, vector<16x16xf32>,
    return
  }
  func.func @transform_0(%arg0: i32) -> (i32, i32) {
    %c0_i32 = arith.constant 0 : i32
    %c0_i32_0 = arith.constant 0 : i32
    return %arg0, %c0_i32 : i32, i32
  }
  func.func @transform_1(%arg0: i32) -> (i32, i32) {
    %c0_i32 = arith.constant 0 : i32
    %c0_i32_0 = arith.constant 0 : i32
    %c0_i32_1 = arith.constant 0 : i32
    return %c0_i32, %c0_i32_0 : i32, i32
  }
  func.func @transform_2(%arg0: i32) -> (i32, i32) {
    %c0_i32 = arith.constant 0 : i32
    %c0_i32_0 = arith.constant 0 : i32
    %c0_i32_1 = arith.constant 0 : i32
    return %c0_i32, %c0_i32_0 : i32, i32
  }
  func.func @transform_3(%arg0: i32) -> (i32, i32) {
    %c0_i32 = arith.constant 0 : i32
    %c0_i32_0 = arith.constant 0 : i32
    return %arg0, %c0_i32 : i32, i32
  }
}

</mosaic_0001>

<bundles_post_ra>
// kernel: tpu_custom_call.1
= control target key start
LH: loop header
LB: loop body
LE: loop exit
PB: predicated region body
PF: predicated region fallthrough
CT: control target
= control target key end

     0   :  { %v501_v2 = vmov 0   ;;  %s627_s0 = inlined_call_operand.vmem [shape: bf16[16,128], index: 0, kind: input, shape index: {}]   ;;  %s628_s1 = inlined_call_operand.vmem [shape: bf16[128,256], index: 1, kind: input, shape index: {}]   ;;  %s629_s2 = inlined_call_operand.vmem [shape: bf16[256,16], index: 2, kind: input, shape index: {}]   ;;  %s630_s3 = inlined_call_operand.hbm [shape: f32[16,16], index: 3, kind: output, shape index: {}]  }
   0x1   :  { %v430_v0 = vld [vmem:[%s628_s1 + $0x74] ss:$8 sps:$4 sm:$0xff]   ;;  %v432_v1 = vld [vmem:[%s628_s1 + $0x70] ss:$8 sps:$4 sm:$0xff]   ;;  %152 = vmatprep.mubr.bf16.mxu0 %v501_v2  ;;  %v433_v3 = vld [vmem:[%s628_s1 + $0x64] ss:$8 sps:$4 sm:$0xff]  }
   0x2   :  { %120 = vmatprep.subr.bf16.mxu0 %v430_v0  ;;  %v435_v4 = vld [vmem:[%s628_s1 + $0x60] ss:$8 sps:$4 sm:$0xff]   ;;  %v436_v5 = vld [vmem:[%s628_s1 + $0x54] ss:$8 sps:$4 sm:$0xff]   ;;  %v438_v6 = vld [vmem:[%s628_s1 + $0x50] ss:$8 sps:$4 sm:$0xff]  }
   0x3   :  { %121 = vmatpush1.bf16.msra.mxu0 %v432_v1  ;;  %v439_v7 = vld [vmem:[%s628_s1 + $0x44] ss:$8 sps:$4 sm:$0xff]   ;;  %v441_v8 = vld [vmem:[%s628_s1 + $0x40] ss:$8 sps:$4 sm:$0xff]   ;;  %v442_v9 = vld [vmem:[%s628_s1 + $0x34] ss:$8 sps:$4 sm:$0xff]  }
   0x4   :  { %122 = vmatprep.subr.bf16.mxu0 %v433_v3  ;;  %v455_v10 = vld [vmem:[%s629_s2 + $0x78] sm:$0xff]   ;;  %v445_v13 = vld [vmem:[%s628_s1 + $0x24] ss:$8 sps:$4 sm:$0xff]   ;;  %v457_v14 = vld [vmem:[%s629_s2 + $0x70] sm:$0xff]  }
   0x5   :  { %v444_v11 = vld [vmem:[%s628_s1 + $0x30] ss:$8 sps:$4 sm:$0xff]   ;;  %404 = vmatprep.subr.bf16.mxu1 %v455_v10  ;;  %v459_v16 = vld [vmem:[%s629_s2 + $0x68] sm:$0xff]   ;;  %v448_v18 = vld [vmem:[%s628_s1 + $0x14] ss:$8 sps:$4 sm:$0xff]  }
   0x6   :  { %v456_v12 = vld [vmem:[%s629_s2 + $0x38] sm:$0xff]   ;;  %v458_v15 = vld [vmem:[%s629_s2 + $0x30] sm:$0xff]   ;;  %v447_v17 = vld [vmem:[%s628_s1 + $0x20] ss:$8 sps:$4 sm:$0xff]  }
   0x7   :  { %123 = vmatpush1.bf16.msra.mxu0 %v435_v4  ;;  %405 = vmatpush3.bf16.msra.mxu1 %v456_v12  ;;  %v460_v19 = vld [vmem:[%s629_s2 + $0x28] sm:$0xff]   ;;  %v461_v20 = vld [vmem:[%s629_s2 + $0x60] sm:$0xff]   ;;  %v450_v21 = vld [vmem:[%s628_s1 + $0x10] ss:$8 sps:$4 sm:$0xff]  }
   0x8   :  { %124 = vmatprep.subr.bf16.mxu0 %v436_v5  ;;  %406 = vmatprep.subr.bf16.mxu1 %v457_v14  ;;  %v462_v22 = vld [vmem:[%s629_s2 + $0x20] sm:$0xff]   ;;  %v463_v24 = vld [vmem:[%s629_s2 + $0x58] sm:$0xff]  }
   0x9   :  { %v451_v23 = vld [vmem:[%s628_s1 + $0x4] ss:$8 sps:$4 sm:$0xff]  }
   0xb   :  { %125 = vmatpush1.bf16.msra.mxu0 %v438_v6  ;;  %407 = vmatpush3.bf16.msra.mxu1 %v458_v15 }
   0xc   :  { %126 = vmatprep.subr.bf16.mxu0 %v439_v7  ;;  %408 = vmatprep.subr.bf16.mxu1 %v459_v16 }
   0xf   :  { %127 = vmatpush1.bf16.msra.mxu0 %v441_v8  ;;  %409 = vmatpush3.bf16.msra.mxu1 %v460_v19 }
  0x10   :  { %128 = vmatprep.subr.bf16.mxu0 %v442_v9  ;;  %410 = vmatprep.subr.bf16.mxu1 %v461_v20 }
  0x13   :  { %129 = vmatpush1.bf16.msra.mxu0 %v444_v11 }
  0x14   :  { %130 = vmatprep.subr.bf16.mxu0 %v445_v13 }
  0x17   :  { %131 = vmatpush1.bf16.msra.mxu0 %v447_v17 }
  0x18   :  { %132 = vmatprep.subr.bf16.mxu0 %v448_v18 }
  0x19   :  { %8 = vsyncpa [#allocation3], 0  ;;  %v453_v25 = vld [vmem:[%s628_s1] ss:$8 sps:$4 sm:$0xff]   ;;  %411 = vmatpush3.bf16.msra.mxu1 %v462_v22  ;;  %v464_v26 = vld [vmem:[%s629_s2 + $0x18] sm:$0xff]   ;;  %vm350_vm0 = vcmask 130048  }
  0x1a   :  { %412 = vmatprep.subr.bf16.mxu1 %v463_v24  ;;  %v454_v27 = vld [vmem:[%s627_s0] sm:$0xff]   ;;  %v465_v28 = vld [vmem:[%s629_s2 + $0x50] sm:$0xff]   ;;  %v467_v30 = vld [vmem:[%s629_s2 + $0x48] sm:$0xff]  }
  0x1b   :  { %133 = vmatpush1.bf16.msra.mxu0 %v450_v21  ;;  %v466_v29 = vld [vmem:[%s629_s2 + $0x10] sm:$0xff]   ;;  %v468_v31 = vld [vmem:[%s629_s2 + $0x8] sm:$0xff]   ;;  %v469_v32 = vld [vmem:[%s629_s2 + $0x40] sm:$0xff]  }
  0x1c   :  { %134 = vmatprep.subr.bf16.mxu0 %v451_v23  ;;  %v470_v33 = vld [vmem:[%s629_s2] sm:$0xff]   ;;  %s502_s2 = smov [#allocation2]  }
  0x1d   :  { %413 = vmatpush3.bf16.msra.mxu1 %v464_v26  ;;  %s358_s22 = sshll.u32 %s502_s2, 4  ;;  %s359_s22 = int_to_ptr.vmem [resolvable:$true] %s358_s22 }
  0x1e   :  { %414 = vmatprep.subr.bf16.mxu1 %v465_v28  ;;  %s479_s23 = scalar_lea.vmem %s359_s22, 256  ;;  %p484_p1 = scmp.lt.s32.totalorder %s359_s22, %s359_s22 }
  0x1f   :  { %135 = vmatpush1.bf16.msra.mxu0 %v453_v25  ;;  %p480_p0 = scmp.ne.s32.totalorder %s359_s22, %s479_s23  ;;  %p485_p2 = scmp.lt.s32.totalorder %s479_s23, %s479_s23 }
  0x21   :  { %415 = vmatpush3.bf16.msra.mxu1 %v466_v29  ;;  %p486_p3 = por %p485_p2, %p484_p1 }
  0x22   :  { %153 = vmatmul.mubr.bf16.vlgmr.msra.gmra.mxu0 %v454_v27  ;;  %416 = vmatprep.subr.bf16.mxu1 %v467_v30 }
  0x23   :  { %p487_p4 = pnand %p486_p3, %p480_p0 }
  0x25   :  { %417 = vmatpush3.bf16.msra.mxu1 %v468_v31 }
  0x26   :  { %418 = vmatprep.subr.bf16.mxu1 %v469_v32 }
  0x29   :  { %419 = vmatpush3.bf16.msra.mxu1 %v470_v33 }
  0xe2   :  { %v154_v34 = vpop.f32.mrf.mxu0 }
  0xe3   :  { %v163_v41 = vmax.f32 %v154_v34, 0.0 }
  0xe4   :  { %v156_v35 = vpop.f32.mrf.mxu0 }
  0xe5   :  { %v164_v39 = vmax.f32 %v156_v35, 0.0 }
  0xe6   :  { %v158_v36 = vpop.f32.mrf.mxu0 }
  0xe7   :  { %v165_v37 = vmax.f32 %v158_v36, 0.0 }
  0xe8   :  { %v160_v38 = vpop.f32.mrf.mxu0 }
  0xe9   :  { %v166_v40 = vmax.f32 %v160_v38, 0.0  ;;  %v167_v43 = vpack.c.bf16 %v165_v37, %v163_v41 }
  0xeb   :  { %v168_v42 = vpack.c.bf16 %v166_v40, %v164_v39 }
  0xed   :  { %329 = vmatprep.mubr.bf16.mxu1 %v168_v42 }
  0xee   :  { %330 = vmatmul.mubr.bf16.vlgmr.msra.gmra.mxu1 %v167_v43 }
 0x1ae   :  { %v420_v44 = vpop.f32.mrf.mxu1 }
 0x1b0   :  { %v421_v45 = vpop.f32.mrf.mxu1 }
 0x1b1   :  { %v422_v46 = vadd.f32 %v421_v45, %v420_v44 }
 0x1b2   :  { %v423_v47 = vpop.f32.mrf.mxu1 }
 0x1b3   :  { %v402_v48 = vmul.f32 -1.442695, %v422_v46 }
 0x1b4   :  { %v424_v49 = vpop.f32.mrf.mxu1 }
 0x1b5   :  { %471 = vpow2.f32 %v402_v48  ;;  %v425_v50 = vadd.f32 %v424_v49, %v423_v47 }
 0x1b7   :  { %v403_v51 = vmul.f32 -1.442695, %v425_v50 }
 0x1b9   :  { %473 = vpow2.f32 %v403_v51 }
 0x1c2   :  { %v472_v52 = vpop.eup %471 }
 0x1c3   :  { %v344_v53 = vadd.f32 1.0, %v472_v52 }
 0x1c5   :  { %475 = vrcp.f32 %v344_v53 }
 0x1c6   :  { %v474_v54 = vpop.eup %473 }
 0x1c7   :  { %v345_v55 = vadd.f32 1.0, %v474_v54 }
 0x1c9   :  { %477 = vrcp.f32 %v345_v55 }
 0x1d2   :  { %v476_v56 = vpop.eup %475 }
 0x1d3   :  { %351 = vst.msk [vmem:[#allocation2] sm:$0xff] %vm350_vm0, %v476_v56 }
 0x1d6   :  { %v478_v57 = vpop.eup %477 }
 0x1d7   :  { %352 = vst.msk [vmem:[#allocation2 + $0x8] sm:$0xff] %vm350_vm0, %v478_v57 }
 0x1d8   :  { %490 = shalt.err (!%p487_p4)
}
 0x1d9   :  { %s503_s24 = smov 128   ;;  %s504_s25 = smov 8  }
 0x1da   :  { %364 = dma.vmem_to_hbm [thread:$0]  %s359_s22, 256, %s630_s3, [#allocation3], %s503_s24, %s503_s24, %s504_s25  }
 0x1db   :  { %499 = dma.done.wait [#allocation3], 256  }
 0x1dc   :  { %500 = vsyncadd [#allocation3], 4294967040 }
 0x1dd   :  { %368 = vsyncpa [#allocation3], 1 }

</bundles_post_ra>
